<compile_context>
chip_gen: v5e
topology: v5e:2x2
jax: 0.10.0
libtpu: 0.0.40
codegen_flags: <defaults>
</compile_context>

<pallas_src>
import jax
import jax.numpy as jnp
from jax.experimental import pallas as pl
from jax.experimental.pallas import tpu as pltpu


def _upsample_kernel(x_ref, s_ref, m_ref, shift_ref, uh_ref, kw_ref, out_ref):
    H = x_ref.shape[1]
    WCo = m_ref.shape[2]

    x = x_ref[0]                                            # (H, W*Cin) bf16

    # --- 3x3 conv: per row-tap k, zero-padded row shift (MXU) + banded matmul ---
    acc = jnp.zeros((H, WCo), jnp.float32)
    for k in range(3):                                      # static unroll (3 taps)
        xk = jax.lax.dot_general(                           # rows h+k-1 (0 at edges)
            s_ref[k], x, (((1,), (0,)), ((), ())),
            preferred_element_type=jnp.float32)             # (H, W*Cin)
        acc = acc + jax.lax.dot_general(                    # width taps + channels
            xk.astype(jnp.bfloat16), m_ref[k],
            (((1,), (0,)), ((), ())),
            preferred_element_type=jnp.float32)             # (H, W*Cout)

    # --- BN (scale folded into m_ref) : shift add + ReLU in f32 on the VPU ---
    y = jnp.maximum(acc + shift_ref[...], 0.0)              # (H, W*Cout)

    # --- bilinear 2x upsample: Uh @ y, then @ kron(Uw^T, I_Cout) (channel-last) ---
    z = jax.lax.dot_general(
        uh_ref[...], y.astype(jnp.bfloat16), (((1,), (0,)), ((), ())),
        preferred_element_type=jnp.float32)                 # (2H, W*Cout)
    o = jax.lax.dot_general(
        z.astype(jnp.bfloat16), kw_ref[...], (((1,), (0,)), ((), ())),
        preferred_element_type=jnp.float32)                 # (2H, 2W*Cout)
    out_ref[0] = o.astype(out_ref.dtype)                    # lane-dense store


def _offset_eye(n, offset):
    """E[i, j] = 1 if i == j + offset else 0  (zero-padded shift / selection)."""
    i = jnp.arange(n)[:, None]
    j = jnp.arange(n)[None, :]
    return (i == j + offset).astype(jnp.float32)


def _bilinear_matrix(out_size, in_size):
    """M (out_size, in_size) with out = M @ in; matches F.interpolate
    (mode='bilinear', align_corners=False). For 2x the weights are 0/0.25/0.75/1,
    all exactly representable in bf16."""
    i = jnp.arange(out_size, dtype=jnp.float32)
    src = (i + 0.5) * (in_size / out_size) - 0.5
    src = jnp.maximum(src, 0.0)
    i0 = jnp.minimum(jnp.floor(src).astype(jnp.int32), in_size - 1)
    i1 = jnp.minimum(i0 + 1, in_size - 1)
    frac = src - i0.astype(jnp.float32)
    rows = jnp.arange(out_size)
    m = jnp.zeros((out_size, in_size), jnp.float32)
    m = m.at[rows, i0].add(1.0 - frac)
    m = m.at[rows, i1].add(frac)
    return m


@jax.jit
def upsample_forward(x_nchw, w_oihw, bias, gamma, beta, run_mean, run_var):
    eps = 1e-5
    N, Cin, H, W = x_nchw.shape
    Cout = w_oihw.shape[0]
    H2, W2 = 2 * H, 2 * W

    # Fold conv bias + inference BN into per-out-channel scale/shift.
    # scale goes into the conv matrices; only the shift add remains in-kernel.
    scale = gamma / jnp.sqrt(run_var + eps)
    shift = beta + (bias - run_mean) * scale

    # NCHW -> lane-dense (N, H, W*Cin), bf16 (interface transpose only).
    x_flat = jnp.transpose(x_nchw, (0, 2, 3, 1)).reshape(N, H, W * Cin)
    x_flat = x_flat.astype(jnp.bfloat16)

    # Conv weights (Cout,Cin,3,3) -> (3,3,Cin,Cout) with BN scale folded in.
    w_hwio = jnp.transpose(w_oihw * scale[:, None, None, None], (2, 3, 1, 0))

    # Row-shift matrices S[k] (H,H): pick input row h+k-1, zeros outside
    # (the conv's height zero-padding is folded in here -> no jnp.pad needed).
    s_mats = jnp.stack([_offset_eye(H, 1 - k) for k in range(3)]).astype(jnp.bfloat16)

    # Banded conv matrices M[k] (W*Cin, W*Cout): width taps + width zero-padding.
    m_mats = jnp.stack([
        sum(jnp.kron(_offset_eye(W, kw - 1), w_hwio[k, kw]) for kw in range(3))
        for k in range(3)
    ]).astype(jnp.bfloat16)

    # Per-channel shift tiled across the flattened (W*Cout) lane dim, f32.
    shift_row = jnp.tile(shift.astype(jnp.float32), W).reshape(1, W * Cout)

    # 2x bilinear upsample matrices (exact in bf16 for scale factor 2).
    uh = _bilinear_matrix(H2, H).astype(jnp.bfloat16)                        # (2H, H)
    kw_mat = jnp.kron(_bilinear_matrix(W2, W).T,
                      jnp.eye(Cout, dtype=jnp.float32)).astype(jnp.bfloat16)  # (W*Cout, 2W*Cout)

    out_flat = pl.pallas_call(
        _upsample_kernel,
        out_shape=jax.ShapeDtypeStruct((N, H2, W2 * Cout), jnp.float32),
        grid_spec=pltpu.PrefetchScalarGridSpec(
            num_scalar_prefetch=0,
            grid=(N,),
            in_specs=[
                pl.BlockSpec((1, H, W * Cin), lambda n: (n, 0, 0)),
                pl.BlockSpec((3, H, H), lambda n: (0, 0, 0)),
                pl.BlockSpec((3, W * Cin, W * Cout), lambda n: (0, 0, 0)),
                pl.BlockSpec((1, W * Cout), lambda n: (0, 0)),
                pl.BlockSpec((H2, H), lambda n: (0, 0)),
                pl.BlockSpec((W * Cout, W2 * Cout), lambda n: (0, 0)),
            ],
            out_specs=pl.BlockSpec((1, H2, W2 * Cout), lambda n: (n, 0, 0)),
        ),
        compiler_params=pltpu.CompilerParams(dimension_semantics=("parallel",)),
    )(x_flat, s_mats, m_mats, shift_row, uh, kw_mat)

    # (N, 2H, 2W*Cout) -> NCHW to match the PyTorch module interface.
    out = out_flat.reshape(N, H2, W2, Cout)
    return jnp.transpose(out, (0, 3, 1, 2))


def _reference(x_nchw, w_oihw, bias, gamma, beta, run_mean, run_var):
    """Plain-JAX f32 reference (conv + BN + ReLU + bilinear 2x), NCHW in/out."""
    eps = 1e-5
    x = jnp.transpose(x_nchw, (0, 2, 3, 1)).astype(jnp.float32)       # NHWC
    w = jnp.transpose(w_oihw, (2, 3, 1, 0)).astype(jnp.float32)       # HWIO
    conv = jax.lax.conv_general_dilated(
        x, w, window_strides=(1, 1), padding=((1, 1), (1, 1)),
        dimension_numbers=("NHWC", "HWIO", "NHWC"))
    scale = gamma / jnp.sqrt(run_var + eps)
    shift = beta + (bias - run_mean) * scale
    y = jnp.maximum(conv * scale + shift, 0.0)                        # (N,H,W,C)
    H, W = y.shape[1], y.shape[2]
    uh = _bilinear_matrix(2 * H, H)
    uw = _bilinear_matrix(2 * W, W)
    out = jnp.einsum("Hh,nhwc->nHwc", uh, y)
    out = jnp.einsum("Ww,nHwc->nHWc", uw, out)
    return jnp.transpose(out, (0, 3, 1, 2))                           # NCHW


if __name__ == "__main__":
    # Small shapes: batch=2, in_channels=4, out_channels=8, spatial=16x16
    N, Cin, Cout, H, W = 2, 4, 8, 16, 16

    key = jax.random.PRNGKey(0)
    kx, kw, kb, kg, kbe, km, kv = jax.random.split(key, 7)

    x = jax.random.normal(kx, (N, Cin, H, W), dtype=jnp.float32)
    conv_w = jax.random.normal(kw, (Cout, Cin, 3, 3), dtype=jnp.float32) * 0.1
    conv_b = jax.random.normal(kb, (Cout,), dtype=jnp.float32) * 0.1
    bn_gamma = 1.0 + 0.1 * jax.random.normal(kg, (Cout,), dtype=jnp.float32)
    bn_beta = 0.1 * jax.random.normal(kbe, (Cout,), dtype=jnp.float32)
    bn_mean = 0.1 * jax.random.normal(km, (Cout,), dtype=jnp.float32)
    bn_var = jnp.abs(jax.random.normal(kv, (Cout,), dtype=jnp.float32)) + 0.5

    out = upsample_forward(x, conv_w, conv_b, bn_gamma, bn_beta, bn_mean, bn_var)
    out = jax.block_until_ready(out)

    ref = _reference(x, conv_w, conv_b, bn_gamma, bn_beta, bn_mean, bn_var)
    assert out.shape == (N, Cout, 2 * H, 2 * W), out.shape
    # bf16 matmul inputs (f32 accumulation) -> loosen tolerance vs. f32 reference.
    assert jnp.allclose(out, ref, rtol=3e-2, atol=3e-2), "mismatch vs reference"

    print("KERNEL_OK")
</pallas_src>

<mosaic_0001>
module attributes {stable_mosaic.version = 11 : i64} {
  func.func @_upsample_kernel(%arg0: i32, %arg1: memref<1x16x64xbf16, #tpu.memory_space<vmem>>, %arg2: memref<3x16x16xbf16, #tpu.memory_space<vmem>>, %arg3: memref<3x64x128xbf16, #tpu.memory_space<vmem>>, %arg4: memref<1x128xf32, #tpu.memory_space<vmem>>, %arg5: memref<32x16xbf16, #tpu.memory_space<vmem>>, %arg6: memref<128x256xbf16, #tpu.memory_space<vmem>>, %arg7: memref<1x32x256xf32, #tpu.memory_space<vmem>>) attributes {dimension_semantics = [#tpu.dimension_semantics<parallel>], iteration_bounds = array<i64: 2>, scalar_prefetch = 0 : i64, scratch_operands = 0 : i64, tpu.core_type = #tpu.core_type<tc>, window_params = [{transform_indices = @transform_0, window_bounds = array<i64: 1, 16, 64>}, {pipeline_mode = #tpu.pipeline_mode<synchronous>, transform_indices = @transform_1, window_bounds = array<i64: 3, 16, 16>}, {pipeline_mode = #tpu.pipeline_mode<synchronous>, transform_indices = @transform_2, window_bounds = array<i64: 3, 64, 128>}, {pipeline_mode = #tpu.pipeline_mode<synchronous>, transform_indices = @transform_3, window_bounds = array<i64: 1, 128>}, {pipeline_mode = #tpu.pipeline_mode<synchronous>, transform_indices = @transform_4, window_bounds = array<i64: 32, 16>}, {pipeline_mode = #tpu.pipeline_mode<synchronous>, transform_indices = @transform_5, window_bounds = array<i64: 128, 256>}, {transform_indices = @transform_6, window_bounds = array<i64: 1, 32, 256>}]} {
    %c0 = arith.constant 0 : index
    %c0_0 = arith.constant 0 : index
    %c0_1 = arith.constant 0 : index
    %0 = vector.load %arg1[%c0, %c0_0, %c0_1] : memref<1x16x64xbf16, #tpu.memory_space<vmem>>, vector<1x16x64xbf16>
    %1 = vector.shape_cast %0 : vector<1x16x64xbf16> to vector<16x64xbf16>
    %cst = arith.constant 0.000000e+00 : f32
    %2 = vector.broadcast %cst : f32 to vector<16x128xf32>
    %c0_2 = arith.constant 0 : index
    %c0_3 = arith.constant 0 : index
    %c0_4 = arith.constant 0 : index
    %3 = vector.load %arg2[%c0_2, %c0_3, %c0_4] : memref<3x16x16xbf16, #tpu.memory_space<vmem>>, vector<1x16x16xbf16>
    %4 = vector.shape_cast %3 : vector<1x16x16xbf16> to vector<16x16xbf16>
    %cst_5 = arith.constant dense<0.000000e+00> : vector<16x64xf32>
    %5 = tpu.matmul %4, %1, %cst_5 {dimension_numbers = #tpu.dot_dimension_numbers<[1], [0], [0], [1], [0, 0, 1, 1], [], []>} : vector<16x16xbf16>, vector<16x64xbf16>, vector<16x64xf32> -> vector<16x64xf32>
    %6 = arith.truncf %5 : vector<16x64xf32> to vector<16x64xbf16>
    %c0_6 = arith.constant 0 : index
    %c0_7 = arith.constant 0 : index
    %c0_8 = arith.constant 0 : index
    %7 = vector.load %arg3[%c0_6, %c0_7, %c0_8] : memref<3x64x128xbf16, #tpu.memory_space<vmem>>, vector<1x64x128xbf16>
    %8 = vector.shape_cast %7 : vector<1x64x128xbf16> to vector<64x128xbf16>
    %cst_9 = arith.constant dense<0.000000e+00> : vector<16x128xf32>
    %9 = tpu.matmul %6, %8, %cst_9 {dimension_numbers = #tpu.dot_dimension_numbers<[1], [0], [0], [1], [0, 0, 1, 1], [], []>} : vector<16x64xbf16>, vector<64x128xbf16>, vector<16x128xf32> -> vector<16x128xf32>
    %10 = arith.addf %2, %9 : vector<16x128xf32>
    %c1 = arith.constant 1 : index
    %c0_10 = arith.constant 0 : index
    %c0_11 = arith.constant 0 : index
    %11 = vector.load %arg2[%c1, %c0_10, %c0_11] : memref<3x16x16xbf16, #tpu.memory_space<vmem>>, vector<1x16x16xbf16>
    %12 = vector.shape_cast %11 : vector<1x16x16xbf16> to vector<16x16xbf16>
    %cst_12 = arith.constant dense<0.000000e+00> : vector<16x64xf32>
    %13 = tpu.matmul %12, %1, %cst_12 {dimension_numbers = #tpu.dot_dimension_numbers<[1], [0], [0], [1], [0, 0, 1, 1], [], []>} : vector<16x16xbf16>, vector<16x64xbf16>, vector<16x64xf32> -> vector<16x64xf32>
    %14 = arith.truncf %13 : vector<16x64xf32> to vector<16x64xbf16>
    %c1_13 = arith.constant 1 : index
    %c0_14 = arith.constant 0 : index
    %c0_15 = arith.constant 0 : index
    %15 = vector.load %arg3[%c1_13, %c0_14, %c0_15] : memref<3x64x128xbf16, #tpu.memory_space<vmem>>, vector<1x64x128xbf16>
    %16 = vector.shape_cast %15 : vector<1x64x128xbf16> to vector<64x128xbf16>
    %cst_16 = arith.constant dense<0.000000e+00> : vector<16x128xf32>
    %17 = tpu.matmul %14, %16, %cst_16 {dimension_numbers = #tpu.dot_dimension_numbers<[1], [0], [0], [1], [0, 0, 1, 1], [], []>} : vector<16x64xbf16>, vector<64x128xbf16>, vector<16x128xf32> -> vector<16x128xf32>
    %18 = arith.addf %10, %17 : vector<16x128xf32>
    %c2 = arith.constant 2 : index
    %c0_17 = arith.constant 0 : index
    %c0_18 = arith.constant 0 : index
    %19 = vector.load %arg2[%c2, %c0_17, %c0_18] : memref<3x16x16xbf16, #tpu.memory_space<vmem>>, vector<1x16x16xbf16>
    %20 = vector.shape_cast %19 : vector<1x16x16xbf16> to vector<16x16xbf16>
    %cst_19 = arith.constant dense<0.000000e+00> : vector<16x64xf32>
    %21 = tpu.matmul %20, %1, %cst_19 {dimension_numbers = #tpu.dot_dimension_numbers<[1], [0], [0], [1], [0, 0, 1, 1], [], []>} : vector<16x16xbf16>, vector<16x64xbf16>, vector<16x64xf32> -> vector<16x64xf32>
    %22 = arith.truncf %21 : vector<16x64xf32> to vector<16x64xbf16>
    %c2_20 = arith.constant 2 : index
    %c0_21 = arith.constant 0 : index
    %c0_22 = arith.constant 0 : index
    %23 = vector.load %arg3[%c2_20, %c0_21, %c0_22] : memref<3x64x128xbf16, #tpu.memory_space<vmem>>, vector<1x64x128xbf16>
    %24 = vector.shape_cast %23 : vector<1x64x128xbf16> to vector<64x128xbf16>
    %cst_23 = arith.constant dense<0.000000e+00> : vector<16x128xf32>
    %25 = tpu.matmul %22, %24, %cst_23 {dimension_numbers = #tpu.dot_dimension_numbers<[1], [0], [0], [1], [0, 0, 1, 1], [], []>} : vector<16x64xbf16>, vector<64x128xbf16>, vector<16x128xf32> -> vector<16x128xf32>
    %26 = arith.addf %18, %25 : vector<16x128xf32>
    %c0_24 = arith.constant 0 : index
    %c0_25 = arith.constant 0 : index
    %27 = vector.load %arg4[%c0_24, %c0_25] : memref<1x128xf32, #tpu.memory_space<vmem>>, vector<1x128xf32>
    %28 = vector.broadcast %27 : vector<1x128xf32> to vector<16x128xf32>
    %29 = arith.addf %26, %28 : vector<16x128xf32>
    %cst_26 = arith.constant 0.000000e+00 : f32
    %30 = vector.broadcast %cst_26 : f32 to vector<16x128xf32>
    %31 = arith.maximumf %29, %30 : vector<16x128xf32>
    %c0_27 = arith.constant 0 : index
    %c0_28 = arith.constant 0 : index
    %32 = vector.load %arg5[%c0_27, %c0_28] : memref<32x16xbf16, #tpu.memory_space<vmem>>, vector<32x16xbf16>
    %33 = arith.truncf %31 : vector<16x128xf32> to vector<16x128xbf16>
    %cst_29 = arith.constant dense<0.000000e+00> : vector<32x128xf32>
    %34 = tpu.matmul %32, %33, %cst_29 {dimension_numbers = #tpu.dot_dimension_numbers<[1], [0], [0], [1], [0, 0, 1, 1], [], []>} : vector<32x16xbf16>, vector<16x128xbf16>, vector<32x128xf32> -> vector<32x128xf32>
    %35 = arith.truncf %34 : vector<32x128xf32> to vector<32x128xbf16>
    %c0_30 = arith.constant 0 : index
    %c0_31 = arith.constant 0 : index
    %36 = vector.load %arg6[%c0_30, %c0_31] : memref<128x256xbf16, #tpu.memory_space<vmem>>, vector<128x256xbf16>
    %cst_32 = arith.constant dense<0.000000e+00> : vector<32x256xf32>
    %37 = tpu.matmul %35, %36, %cst_32 {dimension_numbers = #tpu.dot_dimension_numbers<[1], [0], [0], [1], [0, 0, 1, 1], [], []>} : vector<32x128xbf16>, vector<128x256xbf16>, vector<32x256xf32> -> vector<32x256xf32>
    %c0_33 = arith.constant 0 : index
    %c0_34 = arith.constant 0 : index
    %c0_35 = arith.constant 0 : index
    %38 = vector.load %arg7[%c0_33, %c0_34, %c0_35] : memref<1x32x256xf32, #tpu.memory_space<vmem>>, vector<1x32x256xf32>
    %39 = vector.shape_cast %38 : vector<1x32x256xf32> to vector<32x256xf32>
    %40 = vector.shape_cast %37 : vector<32x256xf32> to vector<1x32x256xf32>
    tpu.vector_store %arg7[%c0_33, %c0_34, %c0_35], %40 {strides = array<i32>} : memref<1x32x256xf32, #tpu.memory_space<vmem>>, vector<1x32x256xf32>,
    return
  }
  func.func @transform_0(%arg0: i32) -> (i32, i32, i32) {
    %c0_i32 = arith.constant 0 : i32
    %c0_i32_0 = arith.constant 0 : i32
    %c0_i32_1 = arith.constant 0 : i32
    return %arg0, %c0_i32, %c0_i32_0 : i32, i32, i32
  }
  func.func @transform_1(%arg0: i32) -> (i32, i32, i32) {
    %c0_i32 = arith.constant 0 : i32
    %c0_i32_0 = arith.constant 0 : i32
    %c0_i32_1 = arith.constant 0 : i32
    %c0_i32_2 = arith.constant 0 : i32
    return %c0_i32, %c0_i32_0, %c0_i32_1 : i32, i32, i32
  }
  func.func @transform_2(%arg0: i32) -> (i32, i32, i32) {
    %c0_i32 = arith.constant 0 : i32
    %c0_i32_0 = arith.constant 0 : i32
    %c0_i32_1 = arith.constant 0 : i32
    %c0_i32_2 = arith.constant 0 : i32
    return %c0_i32, %c0_i32_0, %c0_i32_1 : i32, i32, i32
  }
  func.func @transform_3(%arg0: i32) -> (i32, i32) {
    %c0_i32 = arith.constant 0 : i32
    %c0_i32_0 = arith.constant 0 : i32
    %c0_i32_1 = arith.constant 0 : i32
    return %c0_i32, %c0_i32_0 : i32, i32
  }
  func.func @transform_4(%arg0: i32) -> (i32, i32) {
    %c0_i32 = arith.constant 0 : i32
    %c0_i32_0 = arith.constant 0 : i32
    %c0_i32_1 = arith.constant 0 : i32
    return %c0_i32, %c0_i32_0 : i32, i32
  }
  func.func @transform_5(%arg0: i32) -> (i32, i32) {
    %c0_i32 = arith.constant 0 : i32
    %c0_i32_0 = arith.constant 0 : i32
    %c0_i32_1 = arith.constant 0 : i32
    return %c0_i32, %c0_i32_0 : i32, i32
  }
  func.func @transform_6(%arg0: i32) -> (i32, i32, i32) {
    %c0_i32 = arith.constant 0 : i32
    %c0_i32_0 = arith.constant 0 : i32
    %c0_i32_1 = arith.constant 0 : i32
    return %arg0, %c0_i32, %c0_i32_0 : i32, i32, i32
  }
}

</mosaic_0001>

<bundles_post_ra>
// kernel: tile.8
= control target key start
LH: loop header
LB: loop body
LE: loop exit
PB: predicated region body
PF: predicated region fallthrough
CT: control target
= control target key end

     0   :  { %s28_s0 = inlined_call_operand.vmem [shape: f32[8], index: 0, kind: input, shape index: {}]   ;;  %s29_s1 = inlined_call_operand.vmem [shape: f32[16,8], index: 1, kind: output, shape index: {}]  }
   0x1   :  { %v4_v0 = vld [vmem:[%s28_s0] ss:$0 sm:$0xff] }
   0x2   :  { %5 = vst [vmem:[%s29_s1] sm:$0xff] %v4_v0 }
   0x3   :  { %8 = vst [vmem:[%s29_s1 + $0x8] sm:$0xff] %v4_v0 }

// kernel: tile.9
= control target key start
LH: loop header
LB: loop body
LE: loop exit
PB: predicated region body
PF: predicated region fallthrough
CT: control target
= control target key end

     0   :  { %s131_s10 = smov 120   ;;  %s132_s11 = smov 104   ;;  %vm3_vm0 = vcmask 64512   ;;  %vm9_vm1 = vcmask 1048512   ;;  %vm15_vm2 = vcmask 982912   ;;  %vm21_vm3 = vcmask 917312   ;;  %s207_s0 = inlined_call_operand.vmem [shape: f32[16,8], index: 0, kind: input, shape index: {}]   ;;  %s208_s1 = inlined_call_operand.vmem [shape: f32[1,128], index: 1, kind: output, shape index: {}]  }
   0x1   :  { %v101_v0 = vld [vmem:[%s207_s0 + $0xf] sm:$0x1]   ;;  %v103_v1 = vld [vmem:[%s207_s0 + $0xd] sm:$0x1]   ;;  %v105_v2 = vld [vmem:[%s207_s0 + $0xb] sm:$0x1]  }
   0x2   :  { %7 = vrot.lane.b32.xlu0 %v101_v0, %s131_s10  ;;  %19 = vrot.lane.b32.xlu1 %v103_v1, %s132_s11  ;;  %s133_s14 = smov 88   ;;  %v102_v3 = vld [vmem:[%s207_s0 + $0xe] sm:$0x1]   ;;  %v104_v4 = vld [vmem:[%s207_s0 + $0xc] sm:$0x1]   ;;  %s134_s19 = smov 112  }
   0x3   :  { %31 = vrot.lane.b32.xlu2 %v105_v2, %s133_s14  ;;  %s135_s20 = smov 96   ;;  %v106_v5 = vld [vmem:[%s207_s0 + $0xa] sm:$0x1]   ;;  %s136_s23 = smov 80   ;;  %v107_v6 = vld [vmem:[%s207_s0 + $0x9] sm:$0x1]  }
   0x4   :  { %v108_v7 = vld [vmem:[%s207_s0 + $0x8] sm:$0x1]   ;;  %s137_s28 = smov 72   ;;  %s138_s29 = smov 64   ;;  %v109_v8 = vld [vmem:[%s207_s0 + $0x7] sm:$0x1]  }
   0x5   :  { %s139_s3 = smov 56   ;;  %v110_v9 = vld [vmem:[%s207_s0 + $0x6] sm:$0x1]   ;;  %v111_v10 = vld [vmem:[%s207_s0 + $0x5] sm:$0x1]   ;;  %s140_s8 = smov 48  }
   0x6   :  { %s141_s9 = smov 40   ;;  %v112_v11 = vld [vmem:[%s207_s0 + $0x4] sm:$0x1]   ;;  %s142_s12 = smov 32   ;;  %v113_v12 = vld [vmem:[%s207_s0 + $0x3] sm:$0x1]  }
   0x7   :  { %v114_v13 = vld [vmem:[%s207_s0 + $0x2] sm:$0x1]   ;;  %s143_s17 = smov 24   ;;  %s144_s18 = smov 16   ;;  %v115_v14 = vld [vmem:[%s207_s0 + $0x1] sm:$0x1]  }
   0x8   :  { %s145_s21 = smov 8   ;;  %v2_v15 = vld [vmem:[%s207_s0] sm:$0x1]   ;;  %vm27_vm4 = vcmask 851712   ;;  %vm33_vm5 = vcmask 786112   ;;  %vm39_vm6 = vcmask 720512  }
   0x9   :  { %4 = vst.msk [vmem:[#allocation0] sm:$0x1] %vm3_vm0, %v2_v15   ;;  %vm45_vm7 = vcmask 654912   ;;  %vm51_vm8 = vcmask 589312   ;;  %vm57_vm9 = vcmask 523712   ;;  %vm63_vm10 = vcmask 458112  }
   0xa   :  { %13 = vrot.lane.b32.xlu0 %v102_v3, %s134_s19  ;;  %25 = vrot.lane.b32.xlu1 %v104_v4, %s135_s20  ;;  %vm69_vm11 = vcmask 392512   ;;  %vm75_vm12 = vcmask 326912   ;;  %vm81_vm13 = vcmask 261312   ;;  %vm87_vm14 = vcmask 195712  }
   0xb   :  { %37 = vrot.lane.b32.xlu2 %v106_v5, %s136_s23  ;;  %vm93_vm15 = vcmask 130112  }
  0x12   :  { %43 = vrot.lane.b32.xlu0 %v107_v6, %s137_s28  ;;  %49 = vrot.lane.b32.xlu1 %v108_v7, %s138_s29 }
  0x13   :  { %55 = vrot.lane.b32.xlu2 %v109_v8, %s139_s3 }
  0x1a   :  { %61 = vrot.lane.b32.xlu0 %v110_v9, %s140_s8  ;;  %67 = vrot.lane.b32.xlu1 %v111_v10, %s141_s9 }
  0x1b   :  { %73 = vrot.lane.b32.xlu2 %v112_v11, %s142_s12 }
  0x22   :  { %79 = vrot.lane.b32.xlu0 %v113_v12, %s143_s17  ;;  %85 = vrot.lane.b32.xlu1 %v114_v13, %s144_s18 }
  0x23   :  { %91 = vrot.lane.b32.xlu2 %v115_v14, %s145_s21 }
  0x5d   :  { %v32_v16 = vpop.permute.xlu2 %31  }
  0x65   :  { %v38_v17 = vpop.permute.xlu2 %37  }
  0x6d   :  { %v56_v18 = vpop.permute.xlu2 %55  }
  0x74   :  { %v8_v19 = vpop.permute.xlu0 %7   ;;  %v20_v20 = vpop.permute.xlu1 %19  }
  0x75   :  { %10 = vst.msk [vmem:[#allocation0] sm:$0x1] %vm9_vm1, %v8_v19   ;;  %v74_v21 = vpop.permute.xlu2 %73  }
  0x7c   :  { %v14_v22 = vpop.permute.xlu0 %13   ;;  %v26_v23 = vpop.permute.xlu1 %25  }
  0x7d   :  { %16 = vst.msk [vmem:[#allocation0] sm:$0x1] %vm15_vm2, %v14_v22   ;;  %v92_v24 = vpop.permute.xlu2 %91  }
  0x7e   :  { %22 = vst.msk [vmem:[#allocation0] sm:$0x1] %vm21_vm3, %v20_v20  }
  0x7f   :  { %28 = vst.msk [vmem:[#allocation0] sm:$0x1] %vm27_vm4, %v26_v23  }
  0x80   :  { %34 = vst.msk [vmem:[#allocation0] sm:$0x1] %vm33_vm5, %v32_v16  }
  0x81   :  { %40 = vst.msk [vmem:[#allocation0] sm:$0x1] %vm39_vm6, %v38_v17  }
  0x84   :  { %v44_v25 = vpop.permute.xlu0 %43   ;;  %v50_v26 = vpop.permute.xlu1 %49  }
  0x85   :  { %46 = vst.msk [vmem:[#allocation0] sm:$0x1] %vm45_vm7, %v44_v25  }
  0x86   :  { %52 = vst.msk [vmem:[#allocation0] sm:$0x1] %vm51_vm8, %v50_v26  }
  0x87   :  { %58 = vst.msk [vmem:[#allocation0] sm:$0x1] %vm57_vm9, %v56_v18  }
  0x8c   :  { %v62_v27 = vpop.permute.xlu0 %61   ;;  %v68_v28 = vpop.permute.xlu1 %67  }
  0x8d   :  { %64 = vst.msk [vmem:[#allocation0] sm:$0x1] %vm63_vm10, %v62_v27  }
  0x8e   :  { %70 = vst.msk [vmem:[#allocation0] sm:$0x1] %vm69_vm11, %v68_v28  }
  0x8f   :  { %76 = vst.msk [vmem:[#allocation0] sm:$0x1] %vm75_vm12, %v74_v21  }
  0x94   :  { %v80_v29 = vpop.permute.xlu0 %79   ;;  %v86_v30 = vpop.permute.xlu1 %85  }
  0x95   :  { %82 = vst.msk [vmem:[#allocation0] sm:$0x1] %vm81_vm13, %v80_v29  }
  0x96   :  { %88 = vst.msk [vmem:[#allocation0] sm:$0x1] %vm87_vm14, %v86_v30  }
  0x97   :  { %94 = vst.msk [vmem:[#allocation0] sm:$0x1] %vm93_vm15, %v92_v24  }
  0x9e   :  { %v97_v31 = vld [vmem:[#allocation0] sm:$0x1] }
  0x9f   :  { %100 = vst [vmem:[%s208_s1] sm:$0x1] %v97_v31 }

// kernel: upsample_forward.1
= control target key start
LH: loop header
LB: loop body
LE: loop exit
PB: predicated region body
PF: predicated region fallthrough
CT: control target
= control target key end

     0   :  { %s1001_s21 = smov 0   ;;  %s1177_s0 = inlined_call_operand.vmem [shape: bf16[2,16,64], index: 0, kind: input, shape index: {}]   ;;  %s1178_s1 = inlined_call_operand.vmem [shape: bf16[3,16,16], index: 1, kind: input, shape index: {}]   ;;  %s1179_s2 = inlined_call_operand.vmem [shape: bf16[3,64,128], index: 2, kind: input, shape index: {}]   ;;  %s1180_s3 = inlined_call_operand.vmem [shape: f32[1,128], index: 3, kind: input, shape index: {}]   ;;  %s1181_s4 = inlined_call_operand.vmem [shape: bf16[32,16], index: 4, kind: input, shape index: {}]   ;;  %s1182_s5 = inlined_call_operand.vmem [shape: bf16[128,256], index: 5, kind: input, shape index: {}]   ;;  %s1183_s6 = inlined_call_operand.vmem [shape: f32[2,32,256], index: 6, kind: output, shape index: {}]  }
   0x1 LB: > { %s738_s22 = sadd.s32 4294967295, %s964_s21   ;;  %p742_p0 = scmp.ge.s32.totalorder %s964_s21, 1  ;;  %s964_s21 = sphi %s1001_s21, %s16_s21  }
   0x2   : > { %p212_p1 = scmp.lt.s32.totalorder %s964_s21, 3 }
   0x4   : > { %p213_p2 = pnand %p742_p0, %p212_p1 }
   0x5   : > { %p242_p3 = scmp.lt.s32.totalorder (!%p213_p2), %s738_s22, 1 }
   0x6   : > { %216 = sbr.rel (%p213_p2) target bundleno = 622 (0x26e), region = 44 }
   0xb   : > { %s1185_s22 = smov (!%p242_p3, %s738_s22), 1  ;;  %v916_v1 = vld [vmem:[%s1178_s1] sm:$0xff]  ;;  %v926_v2 = vld [vmem:[%s1178_s1 + $0x10] sm:$0xff]  ;;  %vm268_vm0 = vcmask 130048   ;;  %v920_v3 = vld [vmem:[%s1179_s2 + $0x18] sm:$0xff]  ;;  %vm354_vm1 = vcmask 523264  }
   0xc   : > { %s913_s23 = sshll.u32 %s1185_s22, 3  ;;  %v921_v4 = vld [vmem:[%s1178_s1 + $0x8] sm:$0xff]  ;;  %v919_v5 = vld [vmem:[%s1179_s2 + $0x10] sm:$0xff]  ;;  %v917_v7 = vld [vmem:[%s1179_s2] sm:$0xff]  ;;  %s914_s15 = sshll.u32 %s1185_s22, 6 }
   0xd   : > { %s246_s26 = scalar_lea.vmem %s1177_s0, %s913_s23  ;;  %v918_v6 = vld [vmem:[%s1179_s2 + $0x8] sm:$0xff]  ;;  %v925_v8 = vld [vmem:[%s1179_s2 + $0x38] sm:$0xff]  ;;  %v924_v10 = vld [vmem:[%s1179_s2 + $0x30] sm:$0xff]  ;;  %s251_s18 = scalar_lea.vmem %s1183_s6, %s914_s15 }
   0xe   : > { %v915_v0 = vld [vmem:[%s246_s26] sm:$0xff]  ;;  %v930_v9 = vld [vmem:[%s1179_s2 + $0x58] sm:$0xff]  ;;  %362 = vmatpush.bf16.msra.mxu2 %v925_v8  ;;  %v929_v11 = vld [vmem:[%s1179_s2 + $0x50] sm:$0xff] }
   0xf   : > { %279 = vmatpush.bf16.msra.mxu1 %v915_v0  ;;  %431 = vmatpush.bf16.msra.mxu0 %v915_v0  ;;  %v923_v12 = vld [vmem:[%s1179_s2 + $0x28] sm:$0xff]  ;;  %v922_v14 = vld [vmem:[%s1179_s2 + $0x20] sm:$0xff]  ;;  %v905_v30 = vld [vmem:[%s1182_s5 + $0x70] sm:$0xf] }
  0x10   : > { %v928_v13 = vld [vmem:[%s1179_s2 + $0x48] sm:$0xff]  ;;  %v927_v15 = vld [vmem:[%s1179_s2 + $0x40] sm:$0xff]  ;;  %v948_v31 = vld [vmem:[%s1182_s5 + $0x74] sm:$0xf0] }
  0x11   : > { %v947_v32 = vld [vmem:[%s1182_s5 + $0x74] sm:$0xf]  ;;  %v957_v34 = vld [vmem:[%s1180_s3] ss:$0 sm:$0xff]  ;;  %v906_v35 = vor.u32 %v948_v31, %v905_v30  ;;  %v907_v36 = vld [vmem:[%s1182_s5 + $0x78] sm:$0xf0] }
  0x12   : > { %755 = vmatmul.msk.bf16.vlgmr.msra.gmra.mxu1 %vm268_vm0, %v916_v1  ;;  %811 = vmatmul.msk.bf16.vlgmr.msra.gmra.mxu0 %vm268_vm0, %v926_v2  ;;  %v897_v37 = vld [vmem:[%s1182_s5 + $0x60] sm:$0xf]  ;;  %v910_v39 = vor.u32 %v947_v32, %v907_v36  ;;  %v946_v40 = vld [vmem:[%s1182_s5 + $0x64] sm:$0xf0]  ;;  %v945_v41 = vld [vmem:[%s1182_s5 + $0x64] sm:$0xf] }
  0x13   : > { %313 = vmatpush.bf16.msrb.mxu1 %v915_v0  ;;  %363 = vmatpush.bf16.msra.mxu2 %v924_v10  ;;  %v899_v42 = vld [vmem:[%s1182_s5 + $0x68] sm:$0xf0]  ;;  %v898_v44 = vor.u32 %v946_v40, %v897_v37  ;;  %v889_v47 = vld [vmem:[%s1182_s5 + $0x50] sm:$0xf]  ;;  %v944_v48 = vld [vmem:[%s1182_s5 + $0x54] sm:$0xf0] }
  0x14   : > { %637 = vmatpush.bf16.msra.mxu3 %v906_v35  ;;  %656 = vmatpush.bf16.msrb.mxu0 %v910_v39  ;;  %v902_v46 = vor.u32 %v945_v41, %v899_v42  ;;  %v943_v51 = vld [vmem:[%s1182_s5 + $0x54] sm:$0xf]  ;;  %v891_v52 = vld [vmem:[%s1182_s5 + $0x58] sm:$0xf0]  ;;  %v890_v54 = vor.u32 %v944_v48, %v889_v47  ;;  %v881_v56 = vld [vmem:[%s1182_s5 + $0x40] sm:$0xf] }
  0x15   : > { %v894_v55 = vor.u32 %v943_v51, %v891_v52  ;;  %v942_v57 = vld [vmem:[%s1182_s5 + $0x44] sm:$0xf0]  ;;  %v941_v60 = vld [vmem:[%s1182_s5 + $0x44] sm:$0xf]  ;;  %v883_v61 = vld [vmem:[%s1182_s5 + $0x48] sm:$0xf0] }
  0x16   : > { %v882_v63 = vor.u32 %v942_v57, %v881_v56  ;;  %v931_v0 = vld [vmem:[%s1181_s4] sm:$0xff]  ;;  %v886_v1 = vor.u32 %v941_v60, %v883_v61  ;;  %v873_v2 = vld [vmem:[%s1182_s5 + $0x30] sm:$0xf]  ;;  %v932_v8 = vld [vmem:[%s1181_s4 + $0x8] sm:$0xff] }
  0x17   : > { %403 = vmatpush.bf16.msra.mxu1 %v920_v3  ;;  %364 = vmatpush.bf16.msra.mxu2 %v923_v12  ;;  %v940_v3 = vld [vmem:[%s1182_s5 + $0x34] sm:$0xf0]  ;;  %v938_v10 = vld [vmem:[%s1182_s5 + $0x24] sm:$0xf0] }
  0x18   : > { %638 = vmatpush.bf16.msra.mxu3 %v898_v44  ;;  %657 = vmatpush.bf16.msrb.mxu0 %v902_v46 }
  0x1b   : > { %404 = vmatpush.bf16.msra.mxu1 %v919_v5  ;;  %365 = vmatpush.bf16.msra.mxu2 %v922_v14  ;;  %v875_v5 = vld [vmem:[%s1182_s5 + $0x38] sm:$0xf0] }
  0x1c   : > { %639 = vmatpush.bf16.msra.mxu3 %v890_v54  ;;  %658 = vmatpush.bf16.msrb.mxu0 %v894_v55 }
  0x1f   : > { %405 = vmatpush.bf16.msra.mxu1 %v918_v6  ;;  %v874_v6 = vor.u32 %v940_v3, %v873_v2 }
  0x20   : > { %640 = vmatpush.bf16.msra.mxu3 %v882_v63  ;;  %659 = vmatpush.bf16.msrb.mxu0 %v886_v1 }
  0x22   : > { %762 = vmatmul.msk.bf16.vlgmr.msrb.gmra.mxu1 %vm268_vm0, %v921_v4  ;;  %v939_v4 = vld [vmem:[%s1182_s5 + $0x34] sm:$0xf] }
  0x23   : > { %406 = vmatpush.bf16.msra.mxu1 %v917_v7  ;;  %v878_v7 = vor.u32 %v939_v4, %v875_v5 }
  0x24   : > { %641 = vmatpush.bf16.msra.mxu3 %v874_v6 }
  0x25   : > { %660 = vmatpush.bf16.msrb.mxu0 %v878_v7 }
  0x27   : > { %479 = vmatpush.bf16.msrb.mxu1 %v930_v9  ;;  %v865_v9 = vld [vmem:[%s1182_s5 + $0x20] sm:$0xf] }
  0x28   : > { %v866_v12 = vor.u32 %v938_v10, %v865_v9 }
  0x2a   : > { %642 = vmatpush.bf16.msra.mxu3 %v866_v12 }
  0x2b   : > { %480 = vmatpush.bf16.msrb.mxu1 %v929_v11  ;;  %v937_v11 = vld [vmem:[%s1182_s5 + $0x24] sm:$0xf] }
  0x2f   : > { %481 = vmatpush.bf16.msrb.mxu1 %v928_v13  ;;  %v867_v13 = vld [vmem:[%s1182_s5 + $0x28] sm:$0xf0] }
  0x30   : > { %v870_v14 = vor.u32 %v937_v11, %v867_v13 }
  0x32   : > { %661 = vmatpush.bf16.msrb.mxu0 %v870_v14 }
  0x33   : > { %482 = vmatpush.bf16.msrb.mxu1 %v927_v15  ;;  %v857_v15 = vld [vmem:[%s1182_s5 + $0x10] sm:$0xf] }
  0x8f   : > { %v281_v16 = vpop.f32.mrf.mxu1  ;;  %v433_v19 = vpop.f32.mrf.mxu0 }
  0x97   : > { %v283_v17 = vpop.f32.mrf.mxu1  ;;  %v435_v21 = vpop.f32.mrf.mxu0 }
  0x98   : > { %v286_v18 = vpack.c.bf16 %v283_v17, %v281_v16  ;;  %v438_v22 = vpack.c.bf16 %v435_v21, %v433_v19  ;;  %v936_v16 = vld [vmem:[%s1182_s5 + $0x14] sm:$0xf0]  ;;  %v935_v17 = vld [vmem:[%s1182_s5 + $0x14] sm:$0xf]  ;;  %v859_v19 = vld [vmem:[%s1182_s5 + $0x18] sm:$0xf0] }
  0x99   : > { %v849_v21 = vld [vmem:[%s1182_s5] sm:$0xf] }
  0x9a   : > { %804 = vmatmul.msk.bf16.vlgmr.msra.gmra.mxu1 %vm354_vm1, %v286_v18  ;;  %v858_v18 = vor.u32 %v936_v16, %v857_v15 }
  0x9c   : > { %643 = vmatpush.bf16.msra.mxu3 %v858_v18 }
  0x9f   : > { %v315_v20 = vpop.f32.mrf.mxu1 }
  0xa7   : > { %v317_v23 = vpop.f32.mrf.mxu1 }
  0xa8   : > { %v320_v24 = vpack.c.bf16 %v317_v23, %v315_v20  ;;  %v862_v20 = vor.u32 %v935_v17, %v859_v19  ;;  %v933_v23 = vld [vmem:[%s1182_s5 + $0x4] sm:$0xf] }
  0xaa   : > { %787 = vmatmul.msk.bf16.vlgmr.msra.gmra.mxu2 %vm354_vm1, %v320_v24  ;;  %836 = vmatmul.msk.bf16.vlgmr.msrb.gmra.mxu1 %vm354_vm1, %v438_v22  ;;  %v934_v22 = vld [vmem:[%s1182_s5 + $0x4] sm:$0xf0] }
  0xab   : > { %662 = vmatpush.bf16.msrb.mxu0 %v862_v20  ;;  %v850_v24 = vor.u32 %v934_v22, %v849_v21 }
  0xad   : > { %644 = vmatpush.bf16.msra.mxu3 %v850_v24 }
 0x117   : > { %v408_v25 = vpop.f32.mrf.mxu1 }
 0x11f   : > { %v410_v26 = vpop.f32.mrf.mxu1 }
 0x127   : > { %v484_v27 = vpop.f32.mrf.mxu1 }
 0x12d   : > { %v367_v28 = vpop.f32.mrf.mxu2 }
 0x12e   : > { %v409_v29 = vadd.f32 %v408_v25, %v367_v28  ;;  %v851_v25 = vld [vmem:[%s1182_s5 + $0x8] sm:$0xf0] }
 0x12f   : > { %v486_v45 = vpop.f32.mrf.mxu1 }
 0x130   : > { %v489_v33 = vadd.f32 %v484_v27, %v409_v29 }
 0x132   : > { %v495_v50 = vadd.f32 %v957_v34, %v489_v33 }
 0x134   : > { %v497_v58 = vmax.f32 %v495_v50, 0.0 }
 0x135   : > { %v369_v38 = vpop.f32.mrf.mxu2 }
 0x136   : > { %v411_v43 = vadd.f32 %v410_v26, %v369_v38  ;;  %v854_v26 = vor.u32 %v933_v23, %v851_v25 }
 0x138   : > { %v490_v49 = vadd.f32 %v486_v45, %v411_v43  ;;  %663 = vmatpush.bf16.msrb.mxu0 %v854_v26 }
 0x13a   : > { %v496_v53 = vadd.f32 %v957_v34, %v490_v49 }
 0x13c   : > { %v498_v59 = vmax.f32 %v496_v53, 0.0 }
 0x13e   : > { %v503_v62 = vpack.c.bf16 %v498_v59, %v497_v58 }
 0x140   : > { %527 = vmatpush.bf16.msrb.mxu2 %v503_v62 }
 0x143   : > { %845 = vmatmul.msk.bf16.vlgmr.msrb.gmra.mxu2 %vm268_vm0, %v931_v0 }
 0x153   : > { %846 = vmatmul.msk.bf16.gmra.mxu2 %vm268_vm0, %v932_v8 }
 0x1c6   : > { %v529_v27 = vpop.f32.mrf.mxu2 }
 0x1ce   : > { %v531_v28 = vpop.f32.mrf.mxu2 }
 0x1cf   : > { %v539_v29 = vpack.c.bf16 %v531_v28, %v529_v27 }
 0x1d1   : > { %645 = vmatmul.bf16.vlgmr.msra.gmra.mxu3 %v539_v29  ;;  %664 = vmatmul.bf16.vlgmr.msrb.gmra.mxu0 %v539_v29 }
 0x1d6   : > { %v534_v30 = vpop.f32.mrf.mxu2 }
 0x1de   : > { %v536_v31 = vpop.f32.mrf.mxu2 }
 0x1df   : > { %v540_v32 = vpack.c.bf16 %v536_v31, %v534_v30 }
 0x1e1   : > { %650 = vmatmul.bf16.gmra.mxu3 %v540_v32  ;;  %669 = vmatmul.bf16.gmra.mxu0 %v540_v32 }
 0x24e   : > { %v665_v33 = vpop.f32.mrf.mxu0 }
 0x24f   : > { %676 = vst [vmem:[%s251_s18 + $0x8] sm:$0xff] %v665_v33 }
 0x254   : > { %v646_v34 = vpop.f32.mrf.mxu3 }
 0x255   : > { %675 = vst [vmem:[%s251_s18] sm:$0xff] %v646_v34 }
 0x256   : > { %v667_v35 = vpop.f32.mrf.mxu0 }
 0x257   : > { %678 = vst [vmem:[%s251_s18 + $0x18] sm:$0xff] %v667_v35 }
 0x25c   : > { %v648_v36 = vpop.f32.mrf.mxu3 }
 0x25d   : > { %677 = vst [vmem:[%s251_s18 + $0x10] sm:$0xff] %v648_v36 }
 0x25e   : > { %v670_v37 = vpop.f32.mrf.mxu0 }
 0x25f   : > { %680 = vst [vmem:[%s251_s18 + $0x28] sm:$0xff] %v670_v37 }
 0x264   : > { %v651_v38 = vpop.f32.mrf.mxu3 }
 0x265   : > { %679 = vst [vmem:[%s251_s18 + $0x20] sm:$0xff] %v651_v38 }
 0x266   : > { %v672_v39 = vpop.f32.mrf.mxu0 }
 0x267   : > { %682 = vst [vmem:[%s251_s18 + $0x38] sm:$0xff] %v672_v39 }
 0x26c   : > { %v653_v40 = vpop.f32.mrf.mxu3 }
 0x26d   : > { %681 = vst [vmem:[%s251_s18 + $0x30] sm:$0xff] %v653_v40 }
 0x26e PF: > { %s16_s21 = sadd.s32 1, %s964_s21  }
 0x26f   : > { %p13_p4 = scmp.ge.s32.totalorder %s16_s21, 4  }
 0x271   :  { %15 = sbr.rel (!%p13_p4) target bundleno = 1 (0x1), region = 78 }

</bundles_post_ra>
